<compile_context>
chip_gen: v7x
topology: tpu7x:2x2x1
jax: 0.10.0
libtpu: 0.0.40
codegen_flags: <defaults>
</compile_context>

<pallas_src>
import jax
import jax.numpy as jnp
from jax.experimental import pallas as pl
from jax.experimental.pallas import tpu as pltpu


_SMALL_FALLBACK_BYTES = 512 * 1024  # below this, plain (fusable) jnp.ceil wins


def _ceil_kernel(x_ref, o_ref):
    # Elementwise ceil on the whole VMEM tile (pure VPU work).
    o_ref[...] = jnp.ceil(x_ref[...])


def _round_up(a: int, b: int) -> int:
    return -(-a // b) * b


def _select_tiling() -> tuple[int, int]:
    """Pick (target_block_bytes, vmem_limit_bytes) for the local TPU generation."""
    block_bytes = 4 * 1024 * 1024      # safe, near-roofline default (v5e/v6e)
    vmem_limit = 48 * 1024 * 1024      # explicit: above v5e's 16 MiB default,
                                       # below every generation's physical VMEM
    try:
        info = pltpu.get_tpu_info()
        vmem_cap = getattr(info, "vmem_capacity_bytes", None)
        if vmem_cap is not None and int(vmem_cap) <= 96 * 1024 * 1024:
            # v7x-class: 64 MiB VMEM but ~3.2 TB/s HBM -> bigger blocks to
            # amortize the ~0.35 us per-grid-step overhead.
            # 8 MiB x 2 buffers x (in+out) = 32 MiB < 48 MiB limit.
            block_bytes = 8 * 1024 * 1024
    except Exception:
        pass  # unknown chip: keep conservative defaults
    return block_bytes, vmem_limit


def _ceil_2d(x2d: jax.Array, itemsize: int, sublanes: int,
             block_bytes: int, vmem_limit: int, donate_input: bool) -> jax.Array:
    """Run the streaming ceil kernel over a lane-dense 2D slab."""
    rows, lanes = x2d.shape
    dtype = x2d.dtype

    max_tile_rows = block_bytes // (lanes * itemsize)
    max_tile_rows = max(sublanes, (max_tile_rows // sublanes) * sublanes)
    # Keep >= ~4 grid steps so input/output DMAs pipeline and the "parallel"
    # axis can be split across both v7x TensorCores; never below one sublane
    # group.  Partial edge blocks (rows % tile_rows != 0) are masked by Pallas.
    quarter_rows = _round_up(pl.cdiv(rows, 4), sublanes)
    tile_rows = min(max_tile_rows, quarter_rows)
    if tile_rows >= rows:
        tile_rows = rows  # tiny (forced) inputs: one full-extent block
    grid = (pl.cdiv(rows, tile_rows),)

    extra_kwargs = {}
    if donate_input:
        # ceil is shape/dtype preserving: alias output onto the input when the
        # caller donates (halves peak HBM footprint; XLA copies if not donated).
        extra_kwargs["input_output_aliases"] = {0: 0}

    return pl.pallas_call(
        _ceil_kernel,
        out_shape=jax.ShapeDtypeStruct((rows, lanes), dtype),
        grid_spec=pltpu.PrefetchScalarGridSpec(
            num_scalar_prefetch=0,
            grid=grid,
            in_specs=[pl.BlockSpec((tile_rows, lanes), lambda i: (i, 0))],
            out_specs=pl.BlockSpec((tile_rows, lanes), lambda i: (i, 0)),
        ),
        compiler_params=pltpu.CompilerParams(
            dimension_semantics=("parallel",),
            vmem_limit_bytes=vmem_limit,
        ),
        cost_estimate=pl.CostEstimate(
            flops=rows * lanes,
            transcendentals=0,
            bytes_accessed=2 * rows * lanes * itemsize,
        ),
        **extra_kwargs,
    )(x2d)


def ceil_pallas(x: jax.Array, *, donate_input: bool = False,
                min_kernel_bytes: int = _SMALL_FALLBACK_BYTES) -> jax.Array:
    """Elementwise ceil (forward of the `Ceil` module). Any shape / dtype."""
    orig_shape = x.shape
    dtype = x.dtype

    # ceil on integer / bool dtypes is the identity (torch.ceil would raise;
    # passing through is the benign choice for this forward-only port).
    if not jnp.issubdtype(dtype, jnp.floating):
        return x

    n = x.size
    if n == 0:
        return x

    itemsize = jnp.dtype(dtype).itemsize

    # Fast path: small (or potentially fusable) inputs -> let XLA handle it.
    if n * itemsize < min_kernel_bytes:
        return jnp.ceil(x)

    sublanes = max(8, 32 // itemsize)  # 8 (f32), 16 (bf16), 32 (8-bit)
    block_bytes, vmem_limit = _select_tiling()
    flat = x.reshape(-1)  # contiguous default layout: free bitcast reshape

    if n % 128 == 0:
        # Aligned: run directly on a lane-dense 2D view, no pad, no slice.
        lanes = 1024 if n % 1024 == 0 else 128
        out2d = _ceil_2d(flat.reshape(n // lanes, lanes), itemsize, sublanes,
                         block_bytes, vmem_limit, donate_input)
        return out2d.reshape(orig_shape)

    # Unaligned element count (rare for large tensors): kernel on the aligned
    # prefix, plain jnp.ceil on the <1024-element tail, stitched in the
    # wrapper.  This replaces the old jnp.pad + trailing-slice round trip.
    lanes = 1024
    n_main = (n // lanes) * lanes
    head = _ceil_2d(flat[:n_main].reshape(n_main // lanes, lanes), itemsize,
                    sublanes, block_bytes, vmem_limit, False).reshape(-1)
    tail = jnp.ceil(flat[n_main:])
    return jnp.concatenate([head, tail]).reshape(orig_shape)


if __name__ == "__main__":
    key = jax.random.PRNGKey(0)

    # 1) Module-consistent SMALL input (batch=2, channels=4, 16x16) — exercises
    #    the small-input jnp.ceil fast path.
    x = jax.random.normal(key, (2, 4, 16, 16), dtype=jnp.float32) * 3.0
    y = ceil_pallas(x)
    jax.block_until_ready(y)
    assert y.shape == x.shape and y.dtype == x.dtype
    assert bool(jnp.all(y == jnp.ceil(x)))

    # 1b) Same small input forced through the Pallas kernel path.
    y_forced = ceil_pallas(x, min_kernel_bytes=0)
    jax.block_until_ready(y_forced)
    assert bool(jnp.all(y_forced == jnp.ceil(x)))

    # 2) Larger aligned input (2 MiB f32) — multi-step pipelined kernel path.
    x2 = jax.random.normal(jax.random.PRNGKey(1), (8, 4, 128, 128),
                           dtype=jnp.float32) * 2.5
    y2 = ceil_pallas(x2)
    jax.block_until_ready(y2)
    assert bool(jnp.all(y2 == jnp.ceil(x2)))

    # 3) Large unaligned input — aligned-prefix kernel + jnp tail stitch.
    x3 = jax.random.normal(jax.random.PRNGKey(2), (257, 515),
                           dtype=jnp.float32) * 4.0
    y3 = ceil_pallas(x3)
    jax.block_until_ready(y3)
    assert y3.shape == x3.shape
    assert bool(jnp.all(y3 == jnp.ceil(x3)))

    # 4) bf16 coverage (dtype-aware sublane handling) through the kernel path.
    x4 = (jax.random.normal(jax.random.PRNGKey(3), (4, 512, 512)) * 2.0
          ).astype(jnp.bfloat16)
    y4 = ceil_pallas(x4)
    jax.block_until_ready(y4)
    assert y4.dtype == jnp.bfloat16
    assert bool(jnp.all(y4 == jnp.ceil(x4)))

    print("KERNEL_OK")
</pallas_src>

<mosaic_0001>
module attributes {stable_mosaic.version = 11 : i64} {
  func.func @_ceil_kernel(%arg0: i32, %arg1: memref<2x1024xf32, #tpu.memory_space<vmem>>, %arg2: memref<2x1024xf32, #tpu.memory_space<vmem>>) attributes {dimension_semantics = [#tpu.dimension_semantics<parallel>], iteration_bounds = array<i64: 1>, scalar_prefetch = 0 : i64, scratch_operands = 0 : i64, tpu.core_type = #tpu.core_type<tc>, window_params = [{transform_indices = @transform_0, window_bounds = array<i64: 2, 1024>}, {transform_indices = @transform_1, window_bounds = array<i64: 2, 1024>}]} {
    %c0 = arith.constant 0 : index
    %c0_0 = arith.constant 0 : index
    %0 = vector.load %arg1[%c0, %c0_0] : memref<2x1024xf32, #tpu.memory_space<vmem>>, vector<2x1024xf32>
    %1 = math.ceil %0 : vector<2x1024xf32>
    %c0_1 = arith.constant 0 : index
    %c0_2 = arith.constant 0 : index
    %2 = vector.load %arg2[%c0_1, %c0_2] : memref<2x1024xf32, #tpu.memory_space<vmem>>, vector<2x1024xf32>
    tpu.vector_store %arg2[%c0_1, %c0_2], %1 {strides = array<i32>} : memref<2x1024xf32, #tpu.memory_space<vmem>>, vector<2x1024xf32>,
    return
  }
  func.func @transform_0(%arg0: i32) -> (i32, i32) {
    %c0_i32 = arith.constant 0 : i32
    %c0_i32_0 = arith.constant 0 : i32
    return %arg0, %c0_i32 : i32, i32
  }
  func.func @transform_1(%arg0: i32) -> (i32, i32) {
    %c0_i32 = arith.constant 0 : i32
    %c0_i32_0 = arith.constant 0 : i32
    return %arg0, %c0_i32 : i32, i32
  }
}

</mosaic_0001>

<bundles_post_ra>
// kernel: tpu_custom_call.1
= control target key start
LH: loop header
LB: loop body
LE: loop exit
PB: predicated region body
PF: predicated region fallthrough
CT: control target
= control target key end

     0   :  { %6 = vsyncpa [#allocation3], 0  ;;  %s128_s0 = inlined_call_operand.hbm [shape: f32[2,1024], index: 0, kind: input, shape index: {}]   ;;  %s129_s1 = inlined_call_operand.hbm [shape: f32[2,1024], index: 1, kind: output, shape index: {}]  }
   0x1   :  { %7 = vsyncpa [#allocation4], 0  ;;  %s92_s6 = smov [#allocation2]   ;;  %s44_s10 = scalar_lea.hbm %s128_s0, 256 }
   0x2   :  { %s14_s7 = sshll.u32 %s92_s6, 4  ;;  %p45_p0 = scmp.ne.s32.totalorder %s128_s0, %s44_s10  ;;  %s15_s7 = int_to_ptr.vmem [resolvable:$true] %s14_s7 }
   0x3   :  { %p48_p1 = scmp.lt.u32.totalorder %s44_s10, %s128_s0 }
   0x5   :  { %p50_p2 = pnand %p48_p1, %p45_p0 }
   0x7   :  { %53 = shalt.err (!%p50_p2)
}
   0x8   :  { %s54_s15 = scalar_lea.vmem %s15_s7, 256  ;;  %p59_p4 = scmp.lt.s32.totalorder %s15_s7, %s15_s7 }
   0x9   :  { %p55_p3 = scmp.ne.s32.totalorder %s15_s7, %s54_s15  ;;  %p60_p5 = scmp.lt.s32.totalorder %s54_s15, %s54_s15 }
   0xb   :  { %p61_p6 = por %p60_p5, %p59_p4 }
   0xd   :  { %p62_p7 = pnand %p61_p6, %p55_p3 }
   0xf   :  { %65 = shalt.err (!%p62_p7)
}
  0x10   :  { %17 = dma.hbm_to_vmem [thread:$0]  %s128_s0, 256, %s15_s7, [#allocation3]  }
  0x11   :  { %88 = dma.done.wait [#allocation3], 256  }
  0x12   :  { %89 = vsyncadd [#allocation3], 4294967040  ;;  %s93_s18 = smov [#allocation5]   ;;  %v21_v0 = vld [vmem:[#allocation2] sm:$0xff]  ;;  %v22_v1 = vld [vmem:[#allocation2 + $0x8] sm:$0xff] }
  0x13   :  { %s33_s19 = sshll.u32 %s93_s18, 4  ;;  %v23_v2 = vceil.f32 %v21_v0  ;;  %v24_v3 = vceil.f32 %v22_v1  ;;  %s34_s19 = int_to_ptr.vmem [resolvable:$true] %s33_s19 }
  0x14   :  { %s66_s20 = scalar_lea.vmem %s34_s19, 256  ;;  %p71_p9 = scmp.lt.s32.totalorder %s34_s19, %s34_s19 }
  0x15   :  { %25 = vst [vmem:[#allocation5] sm:$0xff] %v23_v2  ;;  %26 = vst [vmem:[#allocation5 + $0x8] sm:$0xff] %v24_v3  ;;  %p67_p8 = scmp.ne.s32.totalorder %s34_s19, %s66_s20  ;;  %p72_p10 = scmp.lt.s32.totalorder %s66_s20, %s66_s20 }
  0x17   :  { %p73_p11 = por %p72_p10, %p71_p9 }
  0x19   :  { %p74_p12 = pnand %p73_p11, %p67_p8 }
  0x1b   :  { %77 = shalt.err (!%p74_p12)
}
  0x1c   :  { %s78_s22 = scalar_lea.hbm %s129_s1, 256 }
  0x1d   :  { %p79_p13 = scmp.ne.s32.totalorder %s129_s1, %s78_s22  ;;  %p82_p0 = scmp.lt.u32.totalorder %s78_s22, %s129_s1 }
  0x1f   :  { %p84_p1 = pnand %p82_p0, %p79_p13 }
  0x21   :  { %87 = shalt.err (!%p84_p1)
}
  0x22   :  { %36 = dma.vmem_to_hbm [thread:$0]  %s34_s19, 256, %s129_s1, [#allocation4]  }
  0x23   :  { %90 = dma.done.wait [#allocation4], 256  }
  0x24   :  { %91 = vsyncadd [#allocation4], 4294967040 }
  0x25   :  { %40 = vsyncpa [#allocation3], 1 }
  0x26   :  { %41 = vsyncpa [#allocation4], 1 }

</bundles_post_ra>
